<compile_context>
chip_gen: v5e
topology: v5e:2x2
jax: 0.10.0
libtpu: 0.0.40
codegen_flags: <defaults>
</compile_context>

<pallas_src>
import functools

import jax
import jax.numpy as jnp
import numpy as np
from jax.experimental import pallas as pl
from jax.experimental.pallas import tpu as pltpu


# ----------------------------------------------------------------------------
# Pallas kernel: fused MLP forward, feature-major ([F, TM] activations)
# ----------------------------------------------------------------------------
def _icepinn_kernel(*refs, num_hidden: int, is_sf: bool, compute_dtype):
    if num_hidden > 0:
        (x_ref, w1_ref, b1_ref, w2_ref, b2_ref,
         wh_ref, bh_ref, wo_ref, bo_ref, o_ref) = refs
    else:
        (x_ref, w1_ref, b1_ref, w2_ref, b2_ref,
         wo_ref, bo_ref, o_ref) = refs
        wh_ref = bh_ref = None

    cdt = compute_dtype
    x = x_ref[...]                                    # (2, TM) f32, batch in lanes

    # --- first layer: K=2 contraction -> two VPU broadcast-FMAs (f32) --------
    # (for the sf-PINN, 2*pi is already folded into w1/b1 by the wrapper)
    z1 = (w1_ref[:, 0:1] * x[0:1, :]
          + w1_ref[:, 1:2] * x[1:2, :]
          + b1_ref[...])                              # (F1, TM) f32
    h = jnp.sin(z1.astype(cdt)) if is_sf else jnp.tanh(z1.astype(cdt))

    # --- second layer (post_sml / post_fc_in) + tanh --------------------------
    z = jnp.dot(w2_ref[...], h, preferred_element_type=jnp.float32) + b2_ref[...]
    h = jnp.tanh(z.astype(cdt))

    # --- hidden stack: (num_hidden_layers - 2) x (Linear + tanh) --------------
    if num_hidden > 0:
        def layer(l, h):
            z = (jnp.dot(wh_ref[l], h, preferred_element_type=jnp.float32)
                 + bh_ref[l])
            return jnp.tanh(z.astype(cdt))

        if num_hidden <= 8:
            for l in range(num_hidden):               # small L: static unroll
                h = layer(l, h)
        else:
            # deep models: keep program size bounded (loop body already holds a
            # matmul + full-tile tanh, so loop bookkeeping is negligible)
            h = jax.lax.fori_loop(0, num_hidden, layer, h, unroll=2)

    # --- output layer (no activation); lane-dense (2, TM) f32 store ----------
    o_ref[...] = (jnp.dot(wo_ref[...], h, preferred_element_type=jnp.float32)
                  + bo_ref[...]).astype(o_ref.dtype)


# ----------------------------------------------------------------------------
# Helpers: compute dtype / tile-size selection
# ----------------------------------------------------------------------------
def _default_compute_dtype():
    """bf16 transcendentals/matmul operands on bf16-capable EUP/VPU (v6e/v7x)."""
    try:
        kind = jax.devices()[0].device_kind.lower()
    except Exception:
        return jnp.float32
    if ("v6" in kind) or ("v7" in kind) or ("7x" in kind):
        return jnp.bfloat16
    return jnp.float32                                # v5e & older: f32 only


def _pick_block_m(n, cap=4096):
    """Largest lane-dense tile that still yields >= 2 grid steps (v7x megacore)."""
    if n % 128 != 0:
        # correct but uses masked partial stores; pad N to a multiple of 128.
        return n
    n128 = n // 128
    chunks = min(cap // 128, max(1, n128 // 2))       # >= 2 steps when possible
    while n128 % chunks:                              # keep N % block_m == 0
        chunks -= 1
    return 128 * chunks


# ----------------------------------------------------------------------------
# Wrapper: x is [N, 2] (same interface as the PyTorch module) -> [N, 2]
# ----------------------------------------------------------------------------
def icepinn_forward(x, params, *, is_sf: bool, compute_dtype=None,
                    block_m: int | None = None):
    N, f_in = x.shape
    assert f_in == 2
    if compute_dtype is None:
        compute_dtype = _default_compute_dtype()
    cdt = compute_dtype
    f32 = jnp.float32

    w1, b1 = params["w1"], params["b1"]
    w2, b2 = params["w2"], params["b2"]
    wh, bh = params["wh"], params["bh"]
    wo, bo = params["wo"], params["bo"]
    F1, H, L = w1.shape[0], w2.shape[0], wh.shape[0]

    # fold the 2*pi of the sinusoidal mapping into its weights (free, one-time)
    if is_sf:
        w1 = (2.0 * np.pi) * w1
        b1 = (2.0 * np.pi) * b1

    # operand prep (once, outside the kernel): column biases, compute-dtype LHS
    w1k, b1k = w1.astype(f32), b1.reshape(F1, 1).astype(f32)
    w2k, b2k = w2.astype(cdt), b2.reshape(H, 1).astype(f32)
    whk, bhk = wh.astype(cdt), bh.reshape(L, H, 1).astype(f32)
    wok, bok = wo.astype(cdt), bo.reshape(2, 1).astype(f32)

    x_fm = jnp.transpose(x).astype(f32)               # feature-major [2, N]

    if block_m is None:
        block_m = _pick_block_m(N)
    assert N % block_m == 0, "pad batch to a multiple of block_m"
    assert block_m % 128 == 0 or block_m == N, "keep tiles lane-dense"
    grid = (N // block_m,)

    kernel = functools.partial(_icepinn_kernel, num_hidden=L, is_sf=is_sf,
                               compute_dtype=cdt)

    def full_spec(a):
        nd = a.ndim                                    # whole array, resident
        return pl.BlockSpec(a.shape, lambda *_: (0,) * nd)

    in_specs = [pl.BlockSpec((2, block_m), lambda i: (0, i)),   # x tile
                full_spec(w1k), full_spec(b1k),
                full_spec(w2k), full_spec(b2k)]
    inputs = [x_fm, w1k, b1k, w2k, b2k]
    if L > 0:   # guard: num_hidden_layers == 2 would give 0-sized operands
        in_specs += [full_spec(whk), full_spec(bhk)]
        inputs += [whk, bhk]
    in_specs += [full_spec(wok), full_spec(bok)]
    inputs += [wok, bok]

    # advisory cost estimate: kernel is transcendental (tanh/sin) dominated
    flops = int(2 * N * (2 * F1 + F1 * H + L * H * H + 2 * H))
    transcendentals = int(N * (F1 + H * (L + 1)))
    bytes_accessed = int(sum(a.size * a.dtype.itemsize for a in inputs)
                         + 2 * N * 4)

    out_fm = pl.pallas_call(
        kernel,
        out_shape=jax.ShapeDtypeStruct((2, N), f32),
        grid_spec=pltpu.PrefetchScalarGridSpec(
            num_scalar_prefetch=0,
            grid=grid,
            in_specs=in_specs,
            out_specs=pl.BlockSpec((2, block_m), lambda i: (0, i)),
        ),
        compiler_params=pltpu.CompilerParams(
            dimension_semantics=("parallel",),
            vmem_limit_bytes=32 * 1024 * 1024,   # headroom for big tiles on v5e
        ),
        cost_estimate=pl.CostEstimate(
            flops=flops,
            transcendentals=transcendentals,
            bytes_accessed=bytes_accessed,
        ),
    )(*inputs)
    return jnp.transpose(out_fm)                       # back to [N, 2]


# ----------------------------------------------------------------------------
# Deterministic parameter construction (shapes follow IcePINN.__init__);
# only the branch actually used by forward(is_sf) is materialized.
# ----------------------------------------------------------------------------
def make_params(key, num_hidden_layers: int, hidden: int, is_sf: bool):
    f32 = jnp.float32
    H = hidden
    L = num_hidden_layers - 2
    ks = jax.random.split(key, 8)

    if is_sf:
        # SinusoidalMappingLayer(2, 3H): W [3H, 2] (sigma^2 = 1), b zeros
        F1 = 3 * H
        w1 = jax.random.normal(ks[0], (F1, 2), f32)
        b1 = jnp.zeros((F1,), f32)
        w2 = jax.random.normal(ks[2], (H, F1), f32) * 0.1      # post_sml
        b2 = jax.random.normal(ks[3], (H,), f32) * 0.1
    else:
        F1 = H
        w1 = jax.random.normal(ks[0], (F1, 2), f32) * 0.5      # fc_in
        b1 = jax.random.normal(ks[1], (F1,), f32) * 0.1
        w2 = jax.random.normal(ks[2], (H, F1), f32) * 0.2      # post_fc_in
        b2 = jax.random.normal(ks[3], (H,), f32) * 0.1

    if L > 0:
        wh = jax.random.normal(ks[4], (L, H, H), f32) * 0.2    # fc_hidden
        bh = jax.random.normal(ks[5], (L, H), f32) * 0.1
    else:
        wh = jnp.zeros((0, H, H), f32)
        bh = jnp.zeros((0, H), f32)

    wo = jax.random.normal(ks[6], (2, H), f32) * 0.3            # fc_out
    bo = jax.random.normal(ks[7], (2,), f32) * 0.1
    return dict(w1=w1, b1=b1, w2=w2, b2=b2, wh=wh, bh=bh, wo=wo, bo=bo)


# ----------------------------------------------------------------------------
# Pure-JAX reference: mirrors the PyTorch forward exactly (x is [N, 2])
# ----------------------------------------------------------------------------
def reference_forward(x, params, *, is_sf: bool):
    w1, b1 = params["w1"], params["b1"]
    w2, b2 = params["w2"], params["b2"]
    wh, bh = params["wh"], params["bh"]
    wo, bo = params["wo"], params["bo"]

    if is_sf:
        h = jnp.sin(2.0 * np.pi * (x @ w1.T + b1))
    else:
        h = jnp.tanh(x @ w1.T + b1)
    h = jnp.tanh(h @ w2.T + b2)
    for l in range(wh.shape[0]):
        h = jnp.tanh(h @ wh[l].T + bh[l])
    return h @ wo.T + bo


if __name__ == "__main__":
    key = jax.random.PRNGKey(0)
    k_x, k_p, k_p_sf = jax.random.split(key, 3)

    N = 256                  # batch of collocation points -> grid of 2 steps
    HIDDEN = 32              # hidden_layer_size
    NUM_HIDDEN_LAYERS = 4    # -> 2 layers in fc_hidden

    x = jax.random.normal(k_x, (N, 2), jnp.float32)   # (t, z) pairs, torch layout

    auto_dt = _default_compute_dtype()

    for is_sf, kp in ((False, k_p), (True, k_p_sf)):
        params = make_params(kp, NUM_HIDDEN_LAYERS, HIDDEN, is_sf)
        ref = reference_forward(x, params, is_sf=is_sf)

        # strict correctness check in f32
        out = jax.block_until_ready(
            icepinn_forward(x, params, is_sf=is_sf, compute_dtype=jnp.float32))
        assert out.shape == (N, 2)
        assert bool(jnp.allclose(out, ref, atol=1e-5, rtol=1e-5))

        # device-default precision (bf16 on v6e/v7x): run + loose sanity check
        if auto_dt != jnp.float32:
            out_auto = jax.block_until_ready(
                icepinn_forward(x, params, is_sf=is_sf, compute_dtype=auto_dt))
            assert bool(jnp.all(jnp.isfinite(out_auto)))
            assert bool(jnp.max(jnp.abs(out_auto - ref)) < 0.5)

    print("KERNEL_OK")
</pallas_src>

<mosaic_0001>
module attributes {stable_mosaic.version = 11 : i64} {
  func.func @_icepinn_kernel(%arg0: i32, %arg1: memref<2x128xf32, #tpu.memory_space<vmem>>, %arg2: memref<32x2xf32, #tpu.memory_space<vmem>>, %arg3: memref<32x1xf32, #tpu.memory_space<vmem>>, %arg4: memref<32x32xf32, #tpu.memory_space<vmem>>, %arg5: memref<32x1xf32, #tpu.memory_space<vmem>>, %arg6: memref<2x32x32xf32, #tpu.memory_space<vmem>>, %arg7: memref<2x32x1xf32, #tpu.memory_space<vmem>>, %arg8: memref<2x32xf32, #tpu.memory_space<vmem>>, %arg9: memref<2x1xf32, #tpu.memory_space<vmem>>, %arg10: memref<2x128xf32, #tpu.memory_space<vmem>>) attributes {dimension_semantics = [#tpu.dimension_semantics<parallel>], iteration_bounds = array<i64: 2>, scalar_prefetch = 0 : i64, scratch_operands = 0 : i64, tpu.core_type = #tpu.core_type<tc>, window_params = [{transform_indices = @transform_0, window_bounds = array<i64: 2, 128>}, {pipeline_mode = #tpu.pipeline_mode<synchronous>, transform_indices = @transform_1, window_bounds = array<i64: 32, 2>}, {pipeline_mode = #tpu.pipeline_mode<synchronous>, transform_indices = @transform_2, window_bounds = array<i64: 32, 1>}, {pipeline_mode = #tpu.pipeline_mode<synchronous>, transform_indices = @transform_3, window_bounds = array<i64: 32, 32>}, {pipeline_mode = #tpu.pipeline_mode<synchronous>, transform_indices = @transform_4, window_bounds = array<i64: 32, 1>}, {pipeline_mode = #tpu.pipeline_mode<synchronous>, transform_indices = @transform_5, window_bounds = array<i64: 2, 32, 32>}, {pipeline_mode = #tpu.pipeline_mode<synchronous>, transform_indices = @transform_6, window_bounds = array<i64: 2, 32, 1>}, {pipeline_mode = #tpu.pipeline_mode<synchronous>, transform_indices = @transform_7, window_bounds = array<i64: 2, 32>}, {pipeline_mode = #tpu.pipeline_mode<synchronous>, transform_indices = @transform_8, window_bounds = array<i64: 2, 1>}, {transform_indices = @transform_9, window_bounds = array<i64: 2, 128>}]} {
    %c0 = arith.constant 0 : index
    %c0_0 = arith.constant 0 : index
    %0 = vector.load %arg1[%c0, %c0_0] : memref<2x128xf32, #tpu.memory_space<vmem>>, vector<2x128xf32>
    %c0_1 = arith.constant 0 : index
    %c0_2 = arith.constant 0 : index
    %1 = vector.load %arg2[%c0_1, %c0_2] : memref<32x2xf32, #tpu.memory_space<vmem>>, vector<32x1xf32>
    %2 = vector.extract_strided_slice %0 {offsets = [0, 0], sizes = [1, 128], strides = [1, 1]} : vector<2x128xf32> to vector<1x128xf32>
    %3 = vector.broadcast %1 : vector<32x1xf32> to vector<32x128xf32>
    %4 = vector.broadcast %2 : vector<1x128xf32> to vector<32x128xf32>
    %5 = arith.mulf %3, %4 : vector<32x128xf32>
    %c0_3 = arith.constant 0 : index
    %c1 = arith.constant 1 : index
    %6 = vector.load %arg2[%c0_3, %c1] : memref<32x2xf32, #tpu.memory_space<vmem>>, vector<32x1xf32>
    %7 = vector.extract_strided_slice %0 {offsets = [1, 0], sizes = [1, 128], strides = [1, 1]} : vector<2x128xf32> to vector<1x128xf32>
    %8 = vector.broadcast %6 : vector<32x1xf32> to vector<32x128xf32>
    %9 = vector.broadcast %7 : vector<1x128xf32> to vector<32x128xf32>
    %10 = arith.mulf %8, %9 : vector<32x128xf32>
    %11 = arith.addf %5, %10 : vector<32x128xf32>
    %c0_4 = arith.constant 0 : index
    %c0_5 = arith.constant 0 : index
    %12 = vector.load %arg3[%c0_4, %c0_5] : memref<32x1xf32, #tpu.memory_space<vmem>>, vector<32x1xf32>
    %13 = vector.broadcast %12 : vector<32x1xf32> to vector<32x128xf32>
    %14 = arith.addf %11, %13 : vector<32x128xf32>
    %15 = math.tanh %14 : vector<32x128xf32>
    %c0_6 = arith.constant 0 : index
    %c0_7 = arith.constant 0 : index
    %16 = vector.load %arg4[%c0_6, %c0_7] : memref<32x32xf32, #tpu.memory_space<vmem>>, vector<32x32xf32>
    %cst = arith.constant dense<0.000000e+00> : vector<32x128xf32>
    %17 = tpu.matmul %16, %15, %cst {dimension_numbers = #tpu.dot_dimension_numbers<[1], [0], [0], [1], [0, 0, 1, 1], [], []>} : vector<32x32xf32>, vector<32x128xf32>, vector<32x128xf32> -> vector<32x128xf32>
    %c0_8 = arith.constant 0 : index
    %c0_9 = arith.constant 0 : index
    %18 = vector.load %arg5[%c0_8, %c0_9] : memref<32x1xf32, #tpu.memory_space<vmem>>, vector<32x1xf32>
    %19 = vector.broadcast %18 : vector<32x1xf32> to vector<32x128xf32>
    %20 = arith.addf %17, %19 : vector<32x128xf32>
    %21 = math.tanh %20 : vector<32x128xf32>
    %c0_10 = arith.constant 0 : index
    %c0_11 = arith.constant 0 : index
    %c0_12 = arith.constant 0 : index
    %22 = vector.load %arg6[%c0_10, %c0_11, %c0_12] : memref<2x32x32xf32, #tpu.memory_space<vmem>>, vector<1x32x32xf32>
    %23 = vector.shape_cast %22 : vector<1x32x32xf32> to vector<32x32xf32>
    %cst_13 = arith.constant dense<0.000000e+00> : vector<32x128xf32>
    %24 = tpu.matmul %23, %21, %cst_13 {dimension_numbers = #tpu.dot_dimension_numbers<[1], [0], [0], [1], [0, 0, 1, 1], [], []>} : vector<32x32xf32>, vector<32x128xf32>, vector<32x128xf32> -> vector<32x128xf32>
    %c0_14 = arith.constant 0 : index
    %c0_15 = arith.constant 0 : index
    %c0_16 = arith.constant 0 : index
    %25 = vector.load %arg7[%c0_14, %c0_15, %c0_16] : memref<2x32x1xf32, #tpu.memory_space<vmem>>, vector<1x32x1xf32>
    %26 = vector.shape_cast %25 : vector<1x32x1xf32> to vector<32x1xf32>
    %27 = vector.broadcast %26 : vector<32x1xf32> to vector<32x128xf32>
    %28 = arith.addf %24, %27 : vector<32x128xf32>
    %29 = math.tanh %28 : vector<32x128xf32>
    %c1_17 = arith.constant 1 : index
    %c0_18 = arith.constant 0 : index
    %c0_19 = arith.constant 0 : index
    %30 = vector.load %arg6[%c1_17, %c0_18, %c0_19] : memref<2x32x32xf32, #tpu.memory_space<vmem>>, vector<1x32x32xf32>
    %31 = vector.shape_cast %30 : vector<1x32x32xf32> to vector<32x32xf32>
    %cst_20 = arith.constant dense<0.000000e+00> : vector<32x128xf32>
    %32 = tpu.matmul %31, %29, %cst_20 {dimension_numbers = #tpu.dot_dimension_numbers<[1], [0], [0], [1], [0, 0, 1, 1], [], []>} : vector<32x32xf32>, vector<32x128xf32>, vector<32x128xf32> -> vector<32x128xf32>
    %c1_21 = arith.constant 1 : index
    %c0_22 = arith.constant 0 : index
    %c0_23 = arith.constant 0 : index
    %33 = vector.load %arg7[%c1_21, %c0_22, %c0_23] : memref<2x32x1xf32, #tpu.memory_space<vmem>>, vector<1x32x1xf32>
    %34 = vector.shape_cast %33 : vector<1x32x1xf32> to vector<32x1xf32>
    %35 = vector.broadcast %34 : vector<32x1xf32> to vector<32x128xf32>
    %36 = arith.addf %32, %35 : vector<32x128xf32>
    %37 = math.tanh %36 : vector<32x128xf32>
    %c0_24 = arith.constant 0 : index
    %c0_25 = arith.constant 0 : index
    %38 = vector.load %arg8[%c0_24, %c0_25] : memref<2x32xf32, #tpu.memory_space<vmem>>, vector<2x32xf32>
    %cst_26 = arith.constant dense<0.000000e+00> : vector<2x128xf32>
    %39 = tpu.matmul %38, %37, %cst_26 {dimension_numbers = #tpu.dot_dimension_numbers<[1], [0], [0], [1], [0, 0, 1, 1], [], []>} : vector<2x32xf32>, vector<32x128xf32>, vector<2x128xf32> -> vector<2x128xf32>
    %c0_27 = arith.constant 0 : index
    %c0_28 = arith.constant 0 : index
    %40 = vector.load %arg9[%c0_27, %c0_28] : memref<2x1xf32, #tpu.memory_space<vmem>>, vector<2x1xf32>
    %41 = vector.broadcast %40 : vector<2x1xf32> to vector<2x128xf32>
    %42 = arith.addf %39, %41 : vector<2x128xf32>
    %c0_29 = arith.constant 0 : index
    %c0_30 = arith.constant 0 : index
    %43 = vector.load %arg10[%c0_29, %c0_30] : memref<2x128xf32, #tpu.memory_space<vmem>>, vector<2x128xf32>
    tpu.vector_store %arg10[%c0_29, %c0_30], %42 {strides = array<i32>} : memref<2x128xf32, #tpu.memory_space<vmem>>, vector<2x128xf32>,
    return
  }
  func.func @transform_0(%arg0: i32) -> (i32, i32) {
    %c0_i32 = arith.constant 0 : i32
    %c0_i32_0 = arith.constant 0 : i32
    return %c0_i32, %arg0 : i32, i32
  }
  func.func @transform_1(%arg0: i32) -> (i32, i32) {
    %c0_i32 = arith.constant 0 : i32
    %c0_i32_0 = arith.constant 0 : i32
    %c0_i32_1 = arith.constant 0 : i32
    return %c0_i32, %c0_i32_0 : i32, i32
  }
  func.func @transform_2(%arg0: i32) -> (i32, i32) {
    %c0_i32 = arith.constant 0 : i32
    %c0_i32_0 = arith.constant 0 : i32
    %c0_i32_1 = arith.constant 0 : i32
    return %c0_i32, %c0_i32_0 : i32, i32
  }
  func.func @transform_3(%arg0: i32) -> (i32, i32) {
    %c0_i32 = arith.constant 0 : i32
    %c0_i32_0 = arith.constant 0 : i32
    %c0_i32_1 = arith.constant 0 : i32
    return %c0_i32, %c0_i32_0 : i32, i32
  }
  func.func @transform_4(%arg0: i32) -> (i32, i32) {
    %c0_i32 = arith.constant 0 : i32
    %c0_i32_0 = arith.constant 0 : i32
    %c0_i32_1 = arith.constant 0 : i32
    return %c0_i32, %c0_i32_0 : i32, i32
  }
  func.func @transform_5(%arg0: i32) -> (i32, i32, i32) {
    %c0_i32 = arith.constant 0 : i32
    %c0_i32_0 = arith.constant 0 : i32
    %c0_i32_1 = arith.constant 0 : i32
    %c0_i32_2 = arith.constant 0 : i32
    return %c0_i32, %c0_i32_0, %c0_i32_1 : i32, i32, i32
  }
  func.func @transform_6(%arg0: i32) -> (i32, i32, i32) {
    %c0_i32 = arith.constant 0 : i32
    %c0_i32_0 = arith.constant 0 : i32
    %c0_i32_1 = arith.constant 0 : i32
    %c0_i32_2 = arith.constant 0 : i32
    return %c0_i32, %c0_i32_0, %c0_i32_1 : i32, i32, i32
  }
  func.func @transform_7(%arg0: i32) -> (i32, i32) {
    %c0_i32 = arith.constant 0 : i32
    %c0_i32_0 = arith.constant 0 : i32
    %c0_i32_1 = arith.constant 0 : i32
    return %c0_i32, %c0_i32_0 : i32, i32
  }
  func.func @transform_8(%arg0: i32) -> (i32, i32) {
    %c0_i32 = arith.constant 0 : i32
    %c0_i32_0 = arith.constant 0 : i32
    %c0_i32_1 = arith.constant 0 : i32
    return %c0_i32, %c0_i32_0 : i32, i32
  }
  func.func @transform_9(%arg0: i32) -> (i32, i32) {
    %c0_i32 = arith.constant 0 : i32
    %c0_i32_0 = arith.constant 0 : i32
    return %c0_i32, %arg0 : i32, i32
  }
}

</mosaic_0001>

<bundles_post_ra>
// kernel: tpu_custom_call.1
= control target key start
LH: loop header
LB: loop body
LE: loop exit
PB: predicated region body
PF: predicated region fallthrough
CT: control target
= control target key end

     0   :  { %14 = vsyncpa [#allocation3], 0  ;;  %s1172_s0 = inlined_call_operand.vmem [shape: f32[2,256], index: 0, kind: input, shape index: {}]   ;;  %s1173_s1 = inlined_call_operand.vmem [shape: f32[32,2], index: 1, kind: input, shape index: {}]   ;;  %s1174_s2 = inlined_call_operand.vmem [shape: f32[32,1], index: 2, kind: input, shape index: {}]   ;;  %s1175_s3 = inlined_call_operand.vmem [shape: f32[32,32], index: 3, kind: input, shape index: {}]   ;;  %s1176_s4 = inlined_call_operand.vmem [shape: f32[32,1], index: 4, kind: input, shape index: {}]   ;;  %s1177_s5 = inlined_call_operand.vmem [shape: f32[2,32,32], index: 5, kind: input, shape index: {}]   ;;  %s1178_s6 = inlined_call_operand.vmem [shape: f32[2,32,1], index: 6, kind: input, shape index: {}]   ;;  %s1179_s7 = inlined_call_operand.vmem [shape: f32[2,32], index: 7, kind: input, shape index: {}]   ;;  %s1180_s8 = inlined_call_operand.vmem [shape: f32[2,1], index: 8, kind: input, shape index: {}]   ;;  %s1181_s9 = inlined_call_operand.hbm [shape: f32[2,256], index: 9, kind: output, shape index: {}]  }
   0x1   :  { %16 = vsyncpa [#allocation3 + $0x1], 0  ;;  %s972_s30 = smov 0   ;;  %s974_s10 = smov 0  }
   0x2   :  { %s976_s11 = smov 0   ;;  %s978_s12 = smov 0  }
   0x3 LB: > { %s993_s13 = sadd.s32 4294967295, %s918_s12   ;;  %s743_s14 = sadd.s32 4294967294, %s918_s12   ;;  %s918_s12 = sphi %s978_s12, %s1187_s12   ;;  %s914_s11 = sphi %s976_s11, %s1186_s11   ;;  %s910_s10 = sphi %s974_s10, %s1185_s10   ;;  %s906_s30 = sphi %s972_s30, %s1184_s30  }
   0x4   : > { %s997_s15 = sadd.s32 1, %s918_s12   ;;  %s223_s16 = sadd.s32 1, %s914_s11 }
   0x5   : > { %s220_s17 = ssub.s32 %s918_s12, %s997_s15  ;;  %p233_p0 = scmp.ne.s32.totalorder %s914_s11, %s910_s10 }
   0x6   : > { %p221_p1 = scmp.eq.s32.totalorder %s220_s17, 0  ;;  %p234_p2 = scmp.eq.s32.totalorder %s993_s13, 1 }
   0x7   : > { %p239_p3 = scmp.ne.s32.totalorder %s910_s10, %s906_s30  ;;  %p240_p4 = scmp.eq.s32.totalorder %s743_s14, 1 }
   0x8   : > { %s1008_s18 = scalar_select %p221_p1, %s914_s11, %s223_s16  }
   0x9   : > { %p1010_p5 = por %p234_p2, %p233_p0  ;;  %p1014_p6 = por %p240_p4, %p239_p3 }
   0xa   : > { %p746_p7 = scmp.ge.s32.totalorder %s918_s12, 1  ;;  %p289_p8 = scmp.lt.s32.totalorder %s918_s12, 3 }
   0xc   : > { %p290_p9 = pnand %p746_p7, %p289_p8 }
   0xd   : > { %p324_p10 = scmp.lt.s32.totalorder (!%p290_p9), %s993_s13, 1  ;;  %s321_s22 = sand.u32 (!%p290_p9), 1, %s910_s10  }
   0xe   : > { %293 = sbr.rel (%p290_p9) target bundleno = 818 (0x332), region = 56  ;;  %s747_s23 = sshll.u32 (!%p290_p9), %s321_s22, 1 }
   0xf   : > { %s771_s24 = sshll.u32 (!%p290_p9), %s993_s13, 1 }
  0x13   : > { %v332_v0 = vld [vmem:[%s1173_s1 + $0x18] sm:$0xff]  ;;  %v331_v1 = vld [vmem:[%s1173_s1 + $0x10] sm:$0xff]  ;;  %v330_v2 = vld [vmem:[%s1173_s1 + $0x8] sm:$0xff]  ;;  %v920_v3 = vmov 0   ;;  %v921_v4 = vmov 1   ;;  %s325_s27 = scalar_select %p324_p10, %s993_s13, 1 }
  0x14   : > { %819 = vset.pattern.permute.xlu2 %v920_v3  ;;  %817 = vset.pattern.permute.xlu1 %v920_v3  ;;  %v329_v5 = vld [vmem:[%s1173_s1] sm:$0xff]  ;;  %v386_v6 = vld [vmem:[%s1174_s2 + $0x18] sm:$0xff]  ;;  %v385_v7 = vld [vmem:[%s1174_s2 + $0x10] sm:$0xff]  ;;  %vm443_vm0 = vcmask 261120  }
  0x15   : > { %815 = vset.pattern.permute.xlu0 %v920_v3  ;;  %345 = vperm.xlu1 %817, %v331_v1   ;;  %v383_v8 = vld [vmem:[%s1174_s2] sm:$0xff]  ;;  %v384_v9 = vld [vmem:[%s1174_s2 + $0x8] sm:$0xff]  ;;  %v422_v10 = vld [vmem:[%s1176_s4 + $0x18] sm:$0xff]  ;;  %s748_s28 = sshll.u32 %s325_s27, 1  ;;  %s679_s27 = scalar_lea.hbm %s1181_s9, %s771_s24 }
  0x16   : > { %350 = vperm.xlu0 %815, %v332_v0   ;;  %340 = vperm.xlu2 %819, %v330_v2   ;;  %v496_v11 = vld [vmem:[%s1178_s6 + $0x18] sm:$0xff]  ;;  %v421_v12 = vld [vmem:[%s1176_s4 + $0x10] sm:$0xff]  ;;  %v420_v13 = vld [vmem:[%s1176_s4 + $0x8] sm:$0xff]  ;;  %s327_s16 = scalar_lea.vmem %s1172_s0, %s748_s28  ;;  %s323_s28 = scalar_lea.vmem [#allocation2], %s747_s23 }
  0x17   : > { %v493_v14 = vld [vmem:[%s1178_s6] sm:$0xff]  ;;  %v495_v16 = vld [vmem:[%s1178_s6 + $0x10] sm:$0xff]  ;;  %v762_v17 = vld [vmem:[%s1178_s6 + $0x28] sm:$0xff]  ;;  %s681_s29 = sshll.u32 %s323_s28, 4  ;;  %s683_s14 = sshll.u32 %s679_s27, 4  ;;  %s682_s29 = int_to_ptr.vmem [resolvable:$true] %s681_s29  ;;  %s684_s14 = int_to_ptr.hbm [resolvable:$true] %s683_s14 }
  0x18   : > { %v419_v15 = vld [vmem:[%s1176_s4] sm:$0xff]  ;;  %v494_v18 = vld [vmem:[%s1178_s6 + $0x8] sm:$0xff]  ;;  %v764_v19 = vld [vmem:[%s1178_s6 + $0x38] sm:$0xff]  ;;  %s870_s17 = sshra.s32 %s684_s14, 4  ;;  %s876_s23 = scalar_lea.hbm %s1181_s9, 4  ;;  %s871_s17 = int_to_ptr.hbm [resolvable:$true] %s870_s17 }
  0x19   : > { %v763_v20 = vld [vmem:[%s1178_s6 + $0x30] sm:$0xff]  ;;  %v761_v21 = vld [vmem:[%s1178_s6 + $0x20] sm:$0xff]  ;;  %v416_v59 = vld [vmem:[%s1175_s3 + $0x8] sm:$0xff]  ;;  %s872_s21 = scalar_lea.hbm %s871_s17, 2  ;;  %p877_p0 = scmp.lt.s32.totalorder %s871_s17, %s1181_s9 }
  0x1a   : > { %v638_v22 = vld [vmem:[%s1180_s8] sm:$0x3]  ;;  %v417_v60 = vld [vmem:[%s1175_s3 + $0x10] sm:$0xff]  ;;  %v418_v61 = vld [vmem:[%s1175_s3 + $0x18] sm:$0xff]  ;;  %p873_p11 = scmp.ne.s32.totalorder %s871_s17, %s872_s21  ;;  %p878_p1 = scmp.lt.s32.totalorder %s876_s23, %s872_s21 }
  0x1b   : > { %v328_v29 = vld [vmem:[%s327_s16] sm:$0x3]  ;;  %s669_s16 = scalar_lea.sflag [#allocation3], %s321_s22 }
  0x1c   : > { %v374_v30 = vperm.slane %v328_v29, 1  ;;  %v353_v31 = vperm.slane %v328_v29, 0  ;;  %v415_v57 = vld [vmem:[%s1175_s3] sm:$0xff]  ;;  %p874_p12 = pnand %p873_p11, %p1010_p5  ;;  %p879_p2 = por %p878_p1, %p877_p0 }
  0x1d   : > { %818 = vset.pattern.permute.xlu1 %v921_v4 }
  0x1e   : > { %816 = vset.pattern.permute.xlu0 %v921_v4  ;;  %820 = vset.pattern.permute.xlu2 %v921_v4  ;;  %p875_p13 = pneg %p874_p12 }
  0x1f   : > { %371 = vperm.xlu0 %816, %v332_v0   ;;  %367 = vperm.xlu1 %818, %v331_v1  }
  0x20   : > { %363 = vperm.xlu2 %820, %v330_v2   ;;  %p880_p3 = pnand %p879_p2, %p875_p13 }
  0x27   : > { %821 = vset.pattern.permute.xlu1 %v920_v3  ;;  %359 = vperm.xlu0 %816, %v329_v5  }
  0x28   : > { %822 = vset.pattern.permute.xlu2 %v920_v3  ;;  %404 = vperm.xlu1 %821, %v386_v6  }
  0x29   : > { %335 = vperm.xlu2 %822, %v329_v5  }
  0x2f   : > { %823 = vset.pattern.permute.xlu0 %v920_v3 }
  0x30   : > { %399 = vperm.xlu1 %821, %v385_v7   ;;  %389 = vperm.xlu0 %823, %v383_v8  }
  0x31   : > { %394 = vperm.xlu2 %822, %v384_v9  }
  0x38   : > { %440 = vperm.xlu1 %821, %v422_v10   ;;  %514 = vperm.xlu0 %823, %v496_v11  }
  0x39   : > { %435 = vperm.xlu2 %822, %v421_v12  }
  0x40   : > { %430 = vperm.xlu1 %821, %v420_v13   ;;  %499 = vperm.xlu0 %823, %v493_v14   ;;  %v489_v13 = vld [vmem:[%s1177_s5] sm:$0xff] }
  0x41   : > { %425 = vperm.xlu2 %822, %v419_v15   ;;  %v490_v15 = vld [vmem:[%s1177_s5 + $0x8] sm:$0xff] }
  0x48   : > { %509 = vperm.xlu1 %821, %v495_v16   ;;  %579 = vperm.xlu0 %823, %v762_v17   ;;  %v491_v16 = vld [vmem:[%s1177_s5 + $0x10] sm:$0xff]  ;;  %v492_v17 = vld [vmem:[%s1177_s5 + $0x18] sm:$0xff] }
  0x49   : > { %504 = vperm.xlu2 %822, %v494_v18  }
  0x50   : > { %589 = vperm.xlu1 %821, %v764_v19  }
  0x51   : > { %584 = vperm.xlu2 %822, %v763_v20  }
  0x58   : > { %574 = vperm.xlu1 %821, %v761_v21  }
  0x59   : > { %641 = vperm.xlu2 %822, %v638_v22  }
  0x70   : > { %v341_v23 = vpop.permute.xlu2 %340 }
  0x71   : > { %v355_v38 = vmul.f32 %v353_v31, %v341_v23 }
  0x7a   : > { %v364_v26 = vpop.permute.xlu2 %363 }
  0x7b   : > { %v376_v39 = vmul.f32 %v374_v30, %v364_v26 }
  0x7d   : > { %v380_v44 = vadd.f32 %v376_v39, %v355_v38 }
  0x83   : > { %v336_v33 = vpop.permute.xlu2 %335 }
  0x84   : > { %v354_v42 = vmul.f32 %v353_v31, %v336_v33  ;;  %v757_v33 = vld [vmem:[%s1177_s5 + $0x20] sm:$0xff] }
  0x87   : > { %v346_v24 = vpop.permute.xlu1 %345 }
  0x88   : > { %v351_v25 = vpop.permute.xlu0 %350  ;;  %v356_v43 = vmul.f32 %v353_v31, %v346_v24 }
  0x89   : > { %v357_v34 = vmul.f32 %v353_v31, %v351_v25 }
  0x8b   : > { %v395_v46 = vpop.permute.xlu2 %394 }
  0x8c   : > { %v408_v51 = vadd.f32 %v395_v46, %v380_v44 }
  0x91   : > { %v372_v27 = vpop.permute.xlu0 %371  ;;  %v368_v28 = vpop.permute.xlu1 %367 }
  0x92   : > { %v378_v32 = vmul.f32 %v374_v30, %v372_v27  ;;  %v377_v41 = vmul.f32 %v374_v30, %v368_v28 }
  0x93   : > { %v436_v2 = vpop.permute.xlu2 %435 }
  0x94   : > { %v382_v36 = vadd.f32 %v378_v32, %v357_v34  ;;  %v381_v47 = vadd.f32 %v377_v41, %v356_v43 }
  0x99   : > { %v360_v35 = vpop.permute.xlu0 %359 }
  0x9a   : > { %v405_v37 = vpop.permute.xlu1 %404  ;;  %v375_v45 = vmul.f32 %v374_v30, %v360_v35  ;;  %v758_v35 = vld [vmem:[%s1177_s5 + $0x28] sm:$0xff] }
  0x9b   : > { %v410_v40 = vadd.f32 %v405_v37, %v382_v36  ;;  %v426_v8 = vpop.permute.xlu2 %425  ;;  %v759_v36 = vld [vmem:[%s1177_s5 + $0x30] sm:$0xff]  ;;  %v760_v37 = vld [vmem:[%s1177_s5 + $0x38] sm:$0xff] }
  0x9c   : > { %v379_v53 = vadd.f32 %v375_v45, %v354_v42 }
  0x9d   : > { %824 = vtanh.f32 %v410_v40 }
  0xa2   : > { %v400_v48 = vpop.permute.xlu1 %399  ;;  %v390_v49 = vpop.permute.xlu0 %389 }
  0xa3   : > { %v825_v50 = vpop.eup %824  ;;  %v409_v52 = vadd.f32 %v400_v48, %v381_v47  ;;  %v407_v54 = vadd.f32 %v390_v49, %v379_v53  ;;  %v505_v26 = vpop.permute.xlu2 %504  ;;  %v637_v53 = vld [vmem:[%s1179_s7] sm:$0x3] }
  0xa4   : > { %468 = vmatpush.msra.mxu0 %v825_v50 }
  0xa5   : > { %826 = vtanh.f32 %v409_v52 }
  0xa6   : > { %828 = vtanh.f32 %v408_v51 }
  0xa7   : > { %830 = vtanh.f32 %v407_v54 }
  0xaa   : > { %v441_v0 = vpop.permute.xlu1 %440  ;;  %v515_v21 = vpop.permute.xlu0 %514 }
  0xab   : > { %v827_v55 = vpop.eup %826  ;;  %v585_v42 = vpop.permute.xlu2 %584 }
  0xac   : > { %469 = vmatpush.msra.mxu0 %v827_v55  ;;  %v829_v56 = vpop.eup %828 }
  0xad   : > { %v831_v58 = vpop.eup %830 }
  0xae   : > { %470 = vmatpush.msra.mxu0 %v829_v56 }
  0xb0   : > { %471 = vmatpush.msra.mxu0 %v831_v58 }
  0xb1   : > { %749 = vmatmul.msk.f32.vlgmr.msra.gmra.mxu0 %vm443_vm0, %v415_v57 }
  0xb2   : > { %v431_v6 = vpop.permute.xlu1 %430  ;;  %v500_v28 = vpop.permute.xlu0 %499 }
  0xb3   : > { %v642_v55 = vpop.permute.xlu2 %641 }
  0xb9   : > { %750 = vmatmul.msk.f32.gmra.mxu0 %vm443_vm0, %v416_v59 }
  0xba   : > { %v510_v22 = vpop.permute.xlu1 %509  ;;  %v580_v46 = vpop.permute.xlu0 %579 }
  0xc1   : > { %751 = vmatmul.msk.f32.gmra.mxu0 %vm443_vm0, %v417_v60 }
  0xc2   : > { %v590_v41 = vpop.permute.xlu1 %589 }
  0xc9   : > { %752 = vmatmul.msk.f32.gmra.mxu0 %vm443_vm0, %v418_v61 }
  0xca   : > { %v575_v48 = vpop.permute.xlu1 %574 }
 0x12e   : > { %v473_v62 = vpop.f32.mrf.mxu0 }
 0x12f   : > { %v474_v9 = vadd.f32 %v473_v62, %v426_v8 }
 0x136   : > { %v476_v63 = vpop.f32.mrf.mxu0 }
 0x137   : > { %v477_v7 = vadd.f32 %v476_v63, %v431_v6 }
 0x13e   : > { %v479_v1 = vpop.f32.mrf.mxu0 }
 0x13f   : > { %v480_v4 = vadd.f32 %v479_v1, %v436_v2 }
 0x146   : > { %v482_v3 = vpop.f32.mrf.mxu0 }
 0x147   : > { %v483_v5 = vadd.f32 %v482_v3, %v441_v0 }
 0x149   : > { %832 = vtanh.f32 %v483_v5 }
 0x14a   : > { %834 = vtanh.f32 %v480_v4 }
 0x14b   : > { %836 = vtanh.f32 %v477_v7 }
 0x14c   : > { %838 = vtanh.f32 %v474_v9 }
 0x14f   : > { %v833_v10 = vpop.eup %832 }
 0x150   : > { %541 = vmatpush.msra.mxu1 %v833_v10  ;;  %v835_v11 = vpop.eup %834 }
 0x151   : > { %v837_v12 = vpop.eup %836 }
 0x152   : > { %542 = vmatpush.msra.mxu1 %v835_v11  ;;  %v839_v14 = vpop.eup %838 }
 0x154   : > { %543 = vmatpush.msra.mxu1 %v837_v12 }
 0x156   : > { %544 = vmatpush.msra.mxu1 %v839_v14 }
 0x157   : > { %753 = vmatmul.msk.f32.vlgmr.msra.gmra.mxu1 %vm443_vm0, %v489_v13 }
 0x15f   : > { %754 = vmatmul.msk.f32.gmra.mxu1 %vm443_vm0, %v490_v15 }
 0x167   : > { %755 = vmatmul.msk.f32.gmra.mxu1 %vm443_vm0, %v491_v16 }
 0x16f   : > { %756 = vmatmul.msk.f32.gmra.mxu1 %vm443_vm0, %v492_v17 }
 0x1d4   : > { %v546_v18 = vpop.f32.mrf.mxu1 }
 0x1d5   : > { %v547_v29 = vadd.f32 %v546_v18, %v500_v28 }
 0x1dc   : > { %v549_v19 = vpop.f32.mrf.mxu1 }
 0x1dd   : > { %v550_v27 = vadd.f32 %v549_v19, %v505_v26 }
 0x1e4   : > { %v552_v20 = vpop.f32.mrf.mxu1 }
 0x1e5   : > { %v553_v24 = vadd.f32 %v552_v20, %v510_v22 }
 0x1ec   : > { %v555_v23 = vpop.f32.mrf.mxu1 }
 0x1ed   : > { %v556_v25 = vadd.f32 %v555_v23, %v515_v21 }
 0x1ef   : > { %840 = vtanh.f32 %v556_v25 }
 0x1f0   : > { %842 = vtanh.f32 %v553_v24 }
 0x1f1   : > { %844 = vtanh.f32 %v550_v27 }
 0x1f2   : > { %846 = vtanh.f32 %v547_v29 }
 0x1f5   : > { %v841_v30 = vpop.eup %840 }
 0x1f6   : > { %616 = vmatpush.msra.mxu2 %v841_v30  ;;  %v843_v31 = vpop.eup %842 }
 0x1f7   : > { %v845_v32 = vpop.eup %844 }
 0x1f8   : > { %617 = vmatpush.msra.mxu2 %v843_v31  ;;  %v847_v34 = vpop.eup %846 }
 0x1fa   : > { %618 = vmatpush.msra.mxu2 %v845_v32 }
 0x1fc   : > { %619 = vmatpush.msra.mxu2 %v847_v34 }
 0x1fd   : > { %765 = vmatmul.msk.f32.vlgmr.msra.gmra.mxu2 %vm443_vm0, %v757_v33 }
 0x205   : > { %766 = vmatmul.msk.f32.gmra.mxu2 %vm443_vm0, %v758_v35 }
 0x20d   : > { %767 = vmatmul.msk.f32.gmra.mxu2 %vm443_vm0, %v759_v36 }
 0x215   : > { %768 = vmatmul.msk.f32.gmra.mxu2 %vm443_vm0, %v760_v37 }
 0x280   : > { %v621_v38 = vpop.f32.mrf.mxu2 }
 0x281   : > { %v622_v49 = vadd.f32 %v621_v38, %v575_v48 }
 0x288   : > { %v624_v39 = vpop.f32.mrf.mxu2 }
 0x289   : > { %v625_v47 = vadd.f32 %v624_v39, %v580_v46 }
 0x290   : > { %v627_v40 = vpop.f32.mrf.mxu2 }
 0x291   : > { %v628_v44 = vadd.f32 %v627_v40, %v585_v42 }
 0x298   : > { %v630_v43 = vpop.f32.mrf.mxu2 }
 0x299   : > { %v631_v45 = vadd.f32 %v630_v43, %v590_v41 }
 0x29b   : > { %848 = vtanh.f32 %v631_v45 }
 0x29c   : > { %850 = vtanh.f32 %v628_v44 }
 0x29d   : > { %852 = vtanh.f32 %v625_v47 }
 0x29e   : > { %854 = vtanh.f32 %v622_v49 }
 0x2a1   : > { %v849_v50 = vpop.eup %848 }
 0x2a2   : > { %659 = vmatpush.msra.mxu3 %v849_v50  ;;  %v851_v51 = vpop.eup %850 }
 0x2a3   : > { %v853_v52 = vpop.eup %852 }
 0x2a4   : > { %660 = vmatpush.msra.mxu3 %v851_v51  ;;  %v855_v54 = vpop.eup %854 }
 0x2a6   : > { %661 = vmatpush.msra.mxu3 %v853_v52 }
 0x2a8   : > { %662 = vmatpush.msra.mxu3 %v855_v54 }
 0x2a9   : > { %769 = vmatmul.msk.f32.vlgmr.msra.gmra.mxu3 %vm443_vm0, %v637_v53 }
 0x32c   : > { %v664_v56 = vpop.f32.mrf.mxu3 }
 0x32d   : > { %v665_v57 = vadd.f32 %v664_v56, %v642_v55 }
 0x32f   : > { %667 = vst [vmem:[%s323_s28] sm:$0x3] %v665_v57 }
 0x330   : > { %883 = shalt.err (!%p880_p3)
}
 0x331   : > { %774 = dma.vmem_to_hbm [thread:$0]  (%p1010_p5), %s682_s29, 32, %s684_s14, %s669_s16  }
 0x332 PF: > { %p780_p4 = scmp.ge.s32.totalorder %s918_s12, 2  ;;  %s695_s22 = sand.u32 1, %s906_s30  }
 0x333   : > { %s696_s27 = scalar_lea.sflag [#allocation3], %s695_s22 }
 0x334   : > { %p777_p7 = pnand %p780_p4, %p1014_p6 }
 0x336   : > { %p778_p8 = pneg %p777_p7 }
 0x338   : > { %901 = dma.done.wait (%p778_p8), %s696_s27, 32  }
 0x339   : > { %903 = vsyncadd (%p778_p8), %s696_s27, 4294967264  ;;  %p19_p9 = scmp.ge.s32.totalorder %s997_s15, 4   ;;  %s1184_s30 = smov %s910_s10 }
 0x33a   : > { %s1185_s10 = smov %s914_s11  ;;  %s1186_s11 = smov %s1008_s18 }
 0x33b   : > { %s1187_s12 = smov %s997_s15  ;;  %21 = sbr.rel (!%p19_p9) target bundleno = 3 (0x3), region = 93 }
 0x340   :  { %702 = vsyncpa [#allocation3], 1 }
 0x341   :  { %704 = vsyncpa [#allocation3 + $0x1], 1 }

</bundles_post_ra>
